<compile_context>
chip_gen: v7x
topology: tpu7x:2x2x1
jax: 0.10.0
libtpu: 0.0.40
codegen_flags: <defaults>
</compile_context>

<pallas_src>
import functools

import jax
import jax.numpy as jnp
from jax.experimental import pallas as pl
from jax.experimental.pallas import tpu as pltpu


def _round_up(x, m):
    return ((x + m - 1) // m) * m


def _make_mlp_kernel(layer_num):
    """Kernel running `layer_num` Linear(+ReLU) layers fully in VMEM/vregs."""

    def kernel(*refs):
        # refs = (x_ref, w0, b0, ..., w_{L-1}, b_{L-1}, out_ref)
        x_ref = refs[0]
        out_ref = refs[-1]
        param_refs = refs[1:-1]

        h = x_ref[...]
        for i in range(layer_num):
            w = param_refs[2 * i][...]
            b = param_refs[2 * i + 1][...]
            # MXU matmul (operands may be bf16), f32 accumulation.
            lhs = h if h.dtype == w.dtype else h.astype(w.dtype)
            h = jnp.dot(lhs, w, preferred_element_type=jnp.float32) + b
            if i != layer_num - 1:
                h = jnp.maximum(h, 0.0)  # ReLU on the VPU, f32
        out_ref[...] = h.astype(out_ref.dtype)

    return kernel


@functools.partial(jax.jit, static_argnames=("use_bf16_matmul", "max_batch_tile"))
def ddpg_mlp_head_forward(obs, params, *, use_bf16_matmul=False, max_batch_tile=1024):
    """Pallas forward: obs (B, input_dim) -> (B, output_dim).

    params: list of (W, b) with W (in_dim, out_dim), b (1, out_dim), i.e. the
    kernel computes h @ W + b (== torch x @ W_t.T + b with W = W_t.T).
    """
    batch, input_dim = obs.shape
    layer_num = len(params)
    out_dim = params[-1][0].shape[1]

    # Lane-dense output width (multiple of 128 lanes).
    out_padded = _round_up(out_dim, 128)

    # Batch tile: sublane-aligned (16 covers bf16 packing too), capped so the
    # double-buffered obs/out blocks + intermediates stay tiny vs. the v7x
    # 64 MiB VMEM / 32 MiB default scoped limit.
    align = 16 if use_bf16_matmul else 8
    tb = _round_up(min(max_batch_tile, batch), align)
    batch_padded = _round_up(batch, tb)
    grid = (batch_padded // tb,)

    obs_p = obs
    if batch_padded != batch:
        obs_p = jnp.pad(obs, ((0, batch_padded - batch), (0, 0)))

    mm_dtype = jnp.bfloat16 if use_bf16_matmul else jnp.float32
    if use_bf16_matmul:
        obs_p = obs_p.astype(jnp.bfloat16)  # halves obs HBM traffic on v6e/v7x

    # Flatten params; pad the final layer to the lane-dense width (zero columns
    # only produce zero extra outputs, which are sliced off below).
    flat = []
    for i, (w, b) in enumerate(params):
        if i == layer_num - 1 and out_padded != out_dim:
            w = jnp.pad(w, ((0, 0), (0, out_padded - out_dim)))
            b = jnp.pad(b, ((0, 0), (0, out_padded - out_dim)))
        flat.append(w.astype(mm_dtype))          # MXU operand dtype
        flat.append(b.astype(jnp.float32))       # bias add / ReLU stay f32 (v5e-safe)

    # Cost estimate (advisory, helps XLA schedule around the custom call).
    dims_in = [input_dim] + [params[i][0].shape[1] for i in range(layer_num - 1)]
    dims_out = [params[i][0].shape[1] for i in range(layer_num - 1)] + [out_padded]
    flops = sum(2 * batch_padded * di * do for di, do in zip(dims_in, dims_out))
    bytes_accessed = (
        obs_p.size * obs_p.dtype.itemsize
        + batch_padded * out_padded * 4
        + sum(a.size * a.dtype.itemsize for a in flat)
    )
    cost = pl.CostEstimate(
        flops=int(flops), transcendentals=0, bytes_accessed=int(bytes_accessed)
    )

    in_specs = [pl.BlockSpec((tb, input_dim), lambda i: (i, 0))]
    for a in flat:
        # Weights/biases: full-array block, constant index_map -> stay
        # VMEM-resident across all grid steps (no re-fetch per batch tile).
        in_specs.append(pl.BlockSpec(a.shape, lambda i: (0, 0)))
    out_specs = pl.BlockSpec((tb, out_padded), lambda i: (i, 0))

    out = pl.pallas_call(
        _make_mlp_kernel(layer_num),
        out_shape=jax.ShapeDtypeStruct((batch_padded, out_padded), jnp.float32),
        grid=grid,
        in_specs=in_specs,
        out_specs=out_specs,
        compiler_params=pltpu.CompilerParams(dimension_semantics=("parallel",)),
        cost_estimate=cost,
    )(obs_p, *flat)

    return out[:batch, :out_dim]


def init_ddpg_mlp_head_params(key, input_dim, mlp_hidden_dim, output_dim, layer_num):
    """Deterministic init mirroring torch.nn.Linear default (U[-1/sqrt(in), 1/sqrt(in)])."""
    params = []
    for idx in range(layer_num):
        i_dim = input_dim if idx == 0 else mlp_hidden_dim
        o_dim = output_dim if idx == layer_num - 1 else mlp_hidden_dim
        key, kw, kb = jax.random.split(key, 3)
        bound = 1.0 / jnp.sqrt(jnp.float32(i_dim))
        w = jax.random.uniform(kw, (i_dim, o_dim), jnp.float32, -bound, bound)
        b = jax.random.uniform(kb, (1, o_dim), jnp.float32, -bound, bound)
        params.append((w, b))
    return params


def reference_forward(obs, params):
    """Plain-JAX reference matching the PyTorch MLPHead.forward semantics."""
    h = obs
    for i, (w, b) in enumerate(params):
        h = h @ w + b
        if i != len(params) - 1:
            h = jnp.maximum(h, 0.0)
    return h


if __name__ == "__main__":
    # Module hyperparameters (small, consistent with the MLP head).
    input_dim = 16
    mlp_hidden_dim = 32
    output_dim = 8
    layer_num = 3
    action_range = 1.0   # unused by forward()
    noise_std = 0.1      # unused by forward()
    # TODO(synk): evaluate() (tanh * action_range + Normal noise + clamp) is a
    # separate method, not the forward pass; only forward() is kernelized here.

    batch = 8

    key = jax.random.PRNGKey(0)
    key, k_obs = jax.random.split(key)
    obs = jax.random.normal(k_obs, (batch, input_dim), jnp.float32)

    params = init_ddpg_mlp_head_params(
        key, input_dim, mlp_hidden_dim, output_dim, layer_num
    )
    ref = reference_forward(obs, params)

    # f32 path (tight tolerance).
    out = jax.block_until_ready(ddpg_mlp_head_forward(obs, params))
    assert out.shape == (batch, output_dim), out.shape
    assert jnp.allclose(out, ref, atol=1e-5, rtol=1e-5), (
        f"max abs err {jnp.max(jnp.abs(out - ref))}"
    )

    # bf16-operand MXU path (v6e/v7x optimization), f32 accumulation.
    out_bf16 = jax.block_until_ready(
        ddpg_mlp_head_forward(obs, params, use_bf16_matmul=True)
    )
    assert jnp.allclose(out_bf16, ref, atol=5e-2, rtol=5e-2), (
        f"bf16 max abs err {jnp.max(jnp.abs(out_bf16 - ref))}"
    )

    # Larger, non-tile-aligned batch to exercise the batch grid + padding path.
    key, k_big = jax.random.split(key)
    obs_big = jax.random.normal(k_big, (1000, input_dim), jnp.float32)
    out_big = jax.block_until_ready(
        ddpg_mlp_head_forward(obs_big, params, max_batch_tile=256)
    )
    ref_big = reference_forward(obs_big, params)
    assert out_big.shape == (1000, output_dim), out_big.shape
    assert jnp.allclose(out_big, ref_big, atol=1e-4, rtol=1e-4), (
        f"big-batch max abs err {jnp.max(jnp.abs(out_big - ref_big))}"
    )

    print("KERNEL_OK")
</pallas_src>

<mosaic_0001>
module attributes {stable_mosaic.version = 11 : i64} {
  func.func @kernel(%arg0: i32, %arg1: memref<8x16xf32, #tpu.memory_space<vmem>>, %arg2: memref<16x32xf32, #tpu.memory_space<vmem>>, %arg3: memref<1x32xf32, #tpu.memory_space<vmem>>, %arg4: memref<32x32xf32, #tpu.memory_space<vmem>>, %arg5: memref<1x32xf32, #tpu.memory_space<vmem>>, %arg6: memref<32x128xf32, #tpu.memory_space<vmem>>, %arg7: memref<1x128xf32, #tpu.memory_space<vmem>>, %arg8: memref<8x128xf32, #tpu.memory_space<vmem>>) attributes {dimension_semantics = [#tpu.dimension_semantics<parallel>], iteration_bounds = array<i64: 1>, scalar_prefetch = 0 : i64, scratch_operands = 0 : i64, tpu.core_type = #tpu.core_type<tc>, window_params = [{transform_indices = @transform_0, window_bounds = array<i64: 8, 16>}, {pipeline_mode = #tpu.pipeline_mode<synchronous>, transform_indices = @transform_1, window_bounds = array<i64: 16, 32>}, {pipeline_mode = #tpu.pipeline_mode<synchronous>, transform_indices = @transform_2, window_bounds = array<i64: 1, 32>}, {pipeline_mode = #tpu.pipeline_mode<synchronous>, transform_indices = @transform_3, window_bounds = array<i64: 32, 32>}, {pipeline_mode = #tpu.pipeline_mode<synchronous>, transform_indices = @transform_4, window_bounds = array<i64: 1, 32>}, {pipeline_mode = #tpu.pipeline_mode<synchronous>, transform_indices = @transform_5, window_bounds = array<i64: 32, 128>}, {pipeline_mode = #tpu.pipeline_mode<synchronous>, transform_indices = @transform_6, window_bounds = array<i64: 1, 128>}, {transform_indices = @transform_7, window_bounds = array<i64: 8, 128>}]} {
    %c0 = arith.constant 0 : index
    %c0_0 = arith.constant 0 : index
    %0 = vector.load %arg1[%c0, %c0_0] : memref<8x16xf32, #tpu.memory_space<vmem>>, vector<8x16xf32>
    %c0_1 = arith.constant 0 : index
    %c0_2 = arith.constant 0 : index
    %1 = vector.load %arg2[%c0_1, %c0_2] : memref<16x32xf32, #tpu.memory_space<vmem>>, vector<16x32xf32>
    %c0_3 = arith.constant 0 : index
    %c0_4 = arith.constant 0 : index
    %2 = vector.load %arg3[%c0_3, %c0_4] : memref<1x32xf32, #tpu.memory_space<vmem>>, vector<1x32xf32>
    %cst = arith.constant dense<0.000000e+00> : vector<8x32xf32>
    %3 = tpu.matmul %0, %1, %cst {dimension_numbers = #tpu.dot_dimension_numbers<[1], [0], [0], [1], [0, 0, 1, 1], [], []>} : vector<8x16xf32>, vector<16x32xf32>, vector<8x32xf32> -> vector<8x32xf32>
    %4 = vector.broadcast %2 : vector<1x32xf32> to vector<8x32xf32>
    %5 = arith.addf %3, %4 : vector<8x32xf32>
    %cst_5 = arith.constant 0.000000e+00 : f32
    %6 = vector.broadcast %cst_5 : f32 to vector<8x32xf32>
    %7 = arith.maximumf %5, %6 : vector<8x32xf32>
    %c0_6 = arith.constant 0 : index
    %c0_7 = arith.constant 0 : index
    %8 = vector.load %arg4[%c0_6, %c0_7] : memref<32x32xf32, #tpu.memory_space<vmem>>, vector<32x32xf32>
    %c0_8 = arith.constant 0 : index
    %c0_9 = arith.constant 0 : index
    %9 = vector.load %arg5[%c0_8, %c0_9] : memref<1x32xf32, #tpu.memory_space<vmem>>, vector<1x32xf32>
    %cst_10 = arith.constant dense<0.000000e+00> : vector<8x32xf32>
    %10 = tpu.matmul %7, %8, %cst_10 {dimension_numbers = #tpu.dot_dimension_numbers<[1], [0], [0], [1], [0, 0, 1, 1], [], []>} : vector<8x32xf32>, vector<32x32xf32>, vector<8x32xf32> -> vector<8x32xf32>
    %11 = vector.broadcast %9 : vector<1x32xf32> to vector<8x32xf32>
    %12 = arith.addf %10, %11 : vector<8x32xf32>
    %cst_11 = arith.constant 0.000000e+00 : f32
    %13 = vector.broadcast %cst_11 : f32 to vector<8x32xf32>
    %14 = arith.maximumf %12, %13 : vector<8x32xf32>
    %c0_12 = arith.constant 0 : index
    %c0_13 = arith.constant 0 : index
    %15 = vector.load %arg6[%c0_12, %c0_13] : memref<32x128xf32, #tpu.memory_space<vmem>>, vector<32x128xf32>
    %c0_14 = arith.constant 0 : index
    %c0_15 = arith.constant 0 : index
    %16 = vector.load %arg7[%c0_14, %c0_15] : memref<1x128xf32, #tpu.memory_space<vmem>>, vector<1x128xf32>
    %cst_16 = arith.constant dense<0.000000e+00> : vector<8x128xf32>
    %17 = tpu.matmul %14, %15, %cst_16 {dimension_numbers = #tpu.dot_dimension_numbers<[1], [0], [0], [1], [0, 0, 1, 1], [], []>} : vector<8x32xf32>, vector<32x128xf32>, vector<8x128xf32> -> vector<8x128xf32>
    %18 = vector.broadcast %16 : vector<1x128xf32> to vector<8x128xf32>
    %19 = arith.addf %17, %18 : vector<8x128xf32>
    %c0_17 = arith.constant 0 : index
    %c0_18 = arith.constant 0 : index
    %20 = vector.load %arg8[%c0_17, %c0_18] : memref<8x128xf32, #tpu.memory_space<vmem>>, vector<8x128xf32>
    tpu.vector_store %arg8[%c0_17, %c0_18], %19 {strides = array<i32>} : memref<8x128xf32, #tpu.memory_space<vmem>>, vector<8x128xf32>,
    return
  }
  func.func @transform_0(%arg0: i32) -> (i32, i32) {
    %c0_i32 = arith.constant 0 : i32
    %c0_i32_0 = arith.constant 0 : i32
    return %arg0, %c0_i32 : i32, i32
  }
  func.func @transform_1(%arg0: i32) -> (i32, i32) {
    %c0_i32 = arith.constant 0 : i32
    %c0_i32_0 = arith.constant 0 : i32
    %c0_i32_1 = arith.constant 0 : i32
    return %c0_i32, %c0_i32_0 : i32, i32
  }
  func.func @transform_2(%arg0: i32) -> (i32, i32) {
    %c0_i32 = arith.constant 0 : i32
    %c0_i32_0 = arith.constant 0 : i32
    %c0_i32_1 = arith.constant 0 : i32
    return %c0_i32, %c0_i32_0 : i32, i32
  }
  func.func @transform_3(%arg0: i32) -> (i32, i32) {
    %c0_i32 = arith.constant 0 : i32
    %c0_i32_0 = arith.constant 0 : i32
    %c0_i32_1 = arith.constant 0 : i32
    return %c0_i32, %c0_i32_0 : i32, i32
  }
  func.func @transform_4(%arg0: i32) -> (i32, i32) {
    %c0_i32 = arith.constant 0 : i32
    %c0_i32_0 = arith.constant 0 : i32
    %c0_i32_1 = arith.constant 0 : i32
    return %c0_i32, %c0_i32_0 : i32, i32
  }
  func.func @transform_5(%arg0: i32) -> (i32, i32) {
    %c0_i32 = arith.constant 0 : i32
    %c0_i32_0 = arith.constant 0 : i32
    %c0_i32_1 = arith.constant 0 : i32
    return %c0_i32, %c0_i32_0 : i32, i32
  }
  func.func @transform_6(%arg0: i32) -> (i32, i32) {
    %c0_i32 = arith.constant 0 : i32
    %c0_i32_0 = arith.constant 0 : i32
    %c0_i32_1 = arith.constant 0 : i32
    return %c0_i32, %c0_i32_0 : i32, i32
  }
  func.func @transform_7(%arg0: i32) -> (i32, i32) {
    %c0_i32 = arith.constant 0 : i32
    %c0_i32_0 = arith.constant 0 : i32
    return %arg0, %c0_i32 : i32, i32
  }
}

</mosaic_0001>

<bundles_post_ra>
// kernel: ddpg_mlp_head_forward.1
= control target key start
LH: loop header
LB: loop body
LE: loop exit
PB: predicated region body
PF: predicated region fallthrough
CT: control target
= control target key end

     0   :  { %v388_v2 = vmov 0.0|0.0   ;;  %vm389_vm0 = vmmov 0   ;;  %v390_v4 = vmov 0.0   ;;  %s489_s0 = inlined_call_operand.vmem [shape: f32[8,16], index: 0, kind: input, shape index: {}]   ;;  %s490_s1 = inlined_call_operand.vmem [shape: f32[16,32], index: 1, kind: input, shape index: {}]   ;;  %s491_s2 = inlined_call_operand.vmem [shape: f32[1,32], index: 2, kind: input, shape index: {}]   ;;  %s492_s3 = inlined_call_operand.vmem [shape: f32[32,32], index: 3, kind: input, shape index: {}]   ;;  %s493_s4 = inlined_call_operand.vmem [shape: f32[1,32], index: 4, kind: input, shape index: {}]   ;;  %s494_s5 = inlined_call_operand.vmem [shape: f32[32,128], index: 5, kind: input, shape index: {}]   ;;  %s495_s6 = inlined_call_operand.vmem [shape: f32[1,128], index: 6, kind: input, shape index: {}]   ;;  %s496_s7 = inlined_call_operand.hbm [shape: f32[8,128], index: 7, kind: output, shape index: {}]  }
   0x1   :  { %v28_v0 = vld [vmem:[%s490_s1] sm:$0xff]  ;;  %v29_v1 = vld [vmem:[%s490_s1 + $0x8] sm:$0xff]  ;;  %345 = vmatprep.subr.bf16.mxu0 %v388_v2  ;;  %320 = vmatprep.mubr.msk.f32.mxu0 %vm389_vm0, %v390_v4 }
   0x2   :  { %v346_v3 = vpack.c.bf16 %v29_v1, %v28_v0  ;;  %v112_v5 = vld [vmem:[%s492_s3] sm:$0xff]  ;;  %v113_v6 = vld [vmem:[%s492_s3 + $0x8] sm:$0xff]  ;;  %348 = vmatprep.subr.bf16.mxu1 %v388_v2  ;;  %331 = vmatprep.mubr.msk.f32.mxu1 %vm389_vm0, %v390_v4 }
   0x3   :  { %v349_v7 = vpack.c.bf16 %v113_v6, %v112_v5 }
   0x4   :  { %12 = vsyncpa [#allocation3], 0  ;;  %347 = vmatpush3.bf16.msra.mxu0 %v346_v3  ;;  %v27_v8 = vld [vmem:[%s489_s0] sm:$0xff]  ;;  %vm37_vm1 = vcmask 130048   ;;  %v114_v9 = vld [vmem:[%s492_s3 + $0x10] sm:$0xff]  ;;  %vm123_vm2 = vcmask 261120  }
   0x5   :  { %350 = vmatpush3.bf16.msra.mxu1 %v349_v7  ;;  %354 = vmatprep.subr.bf16.mxu0 %v388_v2  ;;  %v115_v10 = vld [vmem:[%s492_s3 + $0x18] sm:$0xff]  ;;  %v198_v12 = vld [vmem:[%s494_s5] sm:$0xff]  ;;  %v199_v13 = vld [vmem:[%s494_s5 + $0x8] sm:$0xff]  ;;  %s391_s25 = smov [#allocation2]  }
   0x6   :  { %351 = vmatprep.subr.bf16.mxu1 %v388_v2  ;;  %v352_v11 = vpack.c.bf16 %v115_v10, %v114_v9  ;;  %v355_v14 = vpack.c.bf16 %v199_v13, %v198_v12  ;;  %v297_v15 = vld [vmem:[%s491_s2] ss:$0 sm:$0xff]  ;;  %v200_v20 = vld [vmem:[%s494_s5 + $0x10] sm:$0xff]  ;;  %v201_v21 = vld [vmem:[%s494_s5 + $0x18] sm:$0xff]  ;;  %s289_s26 = sshll.u32 %s391_s25, 4  ;;  %s290_s26 = int_to_ptr.vmem [resolvable:$true] %s289_s26 }
   0x7   :  { %321 = vmatmul.mubr.msk.f32.vlgmr.msra.gmra.mrb[0].mxu0 %vm37_vm1, %v27_v8  ;;  %v358_v22 = vpack.c.bf16 %v201_v21, %v200_v20  ;;  %v299_v23 = vld [vmem:[%s493_s4] ss:$0 sm:$0xff]  ;;  %s364_s5 = scalar_lea.vmem %s290_s26, 128  ;;  %p369_p1 = scmp.lt.s32.totalorder %s290_s26, %s290_s26 }
   0x8   :  { %342 = vmatprep.mubr.msk.f32.mxu0 %vm389_vm0, %v390_v4  ;;  %356 = vmatpush3.bf16.msra.mxu0 %v355_v14  ;;  %v301_v28 = vld [vmem:[%s495_s6] ss:$0 sm:$0xff]  ;;  %p365_p0 = scmp.ne.s32.totalorder %s290_s26, %s364_s5  ;;  %p370_p2 = scmp.lt.s32.totalorder %s364_s5, %s364_s5 }
   0x9   :  { %353 = vmatpush3.bf16.msra.mxu1 %v352_v11  ;;  %357 = vmatprep.subr.bf16.mxu0 %v388_v2 }
   0xa   :  { %p371_p3 = por %p370_p2, %p369_p1 }
   0xc   :  { %359 = vmatpush3.bf16.msra.mxu0 %v358_v22  ;;  %p372_p4 = pnand %p371_p3, %p365_p0 }
  0xda   :  { %v107_v16 = vpop.f32.mrb[0].mxu0 }
  0xdb   :  { %v108_v17 = vadd.f32 %v297_v15, %v107_v16  ;;  %v322_v18 = vpop.f32.mrb[1].mxu0 }
  0xdd   :  { %v111_v19 = vmax.f32 %v108_v17, 0.0 }
  0xdf   :  { %332 = vmatmul.mubr.msk.f32.vlgmr.msra.gmra.mrb[0].mxu1 %vm123_vm2, %v111_v19 }
 0x1b2   :  { %v193_v24 = vpop.f32.mrb[0].mxu1 }
 0x1b3   :  { %v194_v25 = vadd.f32 %v299_v23, %v193_v24  ;;  %v333_v26 = vpop.f32.mrb[1].mxu1 }
 0x1b5   :  { %v197_v27 = vmax.f32 %v194_v25, 0.0 }
 0x1b7   :  { %343 = vmatmul.mubr.msk.f32.vlgmr.msra.gmra.mrb[2].mxu0 %vm123_vm2, %v197_v27 }
 0x28a   :  { %v278_v29 = vpop.f32.mrb[2].mxu0 }
 0x28b   :  { %v279_v30 = vadd.f32 %v301_v28, %v278_v29  ;;  %v344_v31 = vpop.f32.mrb[3].mxu0 }
 0x28d   :  { %282 = vst [vmem:[#allocation2] sm:$0xff] %v279_v30 }
 0x28e   :  { %375 = shalt.err (!%p372_p4)
}
 0x28f   :  { %s376_s28 = scalar_lea.hbm %s496_s7, 128 }
 0x290   :  { %p377_p5 = scmp.ne.s32.totalorder %s496_s7, %s376_s28  ;;  %p380_p6 = scmp.lt.u32.totalorder %s376_s28, %s496_s7 }
 0x292   :  { %p382_p7 = pnand %p380_p6, %p377_p5 }
 0x294   :  { %385 = shalt.err (!%p382_p7)
}
 0x295   :  { %292 = dma.vmem_to_hbm [thread:$0]  %s290_s26, 128, %s496_s7, [#allocation3]  }
 0x296   :  { %386 = dma.done.wait [#allocation3], 128  }
 0x297   :  { %387 = vsyncadd [#allocation3], 4294967168 }
 0x298   :  { %296 = vsyncpa [#allocation3], 1 }

</bundles_post_ra>
